<compile_context>
chip_gen: v5e
topology: v5e:2x2
jax: 0.10.0
libtpu: 0.0.40
codegen_flags: <defaults>
</compile_context>

<pallas_src>
import functools

import jax
import jax.numpy as jnp
from jax.experimental import pallas as pl
from jax.experimental.pallas import tpu as pltpu


def _aligner_kernel(xk_ref, xv_ref, wk_ref, wv_ref, zk_ref, zv_ref):
    """Two tiny row-tile matmuls + ReLU, fused in one pipelined body."""
    zk = jnp.dot(xk_ref[...], wk_ref[...], preferred_element_type=jnp.float32)
    zk_ref[...] = jnp.maximum(zk, 0.0).astype(zk_ref.dtype)
    zv = jnp.dot(xv_ref[...], wv_ref[...], preferred_element_type=jnp.float32)
    zv_ref[...] = jnp.maximum(zv, 0.0).astype(zv_ref.dtype)


def _round_up(x: int, mult: int) -> int:
    return ((x + mult - 1) // mult) * mult


@functools.partial(jax.jit, static_argnames=("tile_m",))
def numeric_aligner(x_keys, x_vals, w_key, w_val, *, tile_m: int = 1024):
    """Pallas forward pass of NumericAligner (simple/simple, no bias, relu).

    Args:
      x_keys: [..., x_key_dim] float array.
      x_vals: [..., x_val_dim] float array (same leading dims as x_keys).
      w_key:  [z_key_dim, x_key_dim] weight (PyTorch nn.Linear layout).
      w_val:  [z_val_dim, x_val_dim] weight (PyTorch nn.Linear layout).

    Returns:
      (z_key_emb [..., z_key_dim], z_val_emb [..., z_val_dim])
    """
    batch_shape = x_keys.shape[:-1]
    assert x_vals.shape[:-1] == batch_shape, "x_keys/x_vals leading dims differ"
    kk = x_keys.shape[-1]
    kv = x_vals.shape[-1]
    nk = w_key.shape[0]
    nv = w_val.shape[0]
    assert w_key.shape[1] == kk and w_val.shape[1] == kv

    m = 1
    for d in batch_shape:
        m *= d
    out_dtype = x_keys.dtype

    # Flatten leading dims (metadata-only reshape) and transpose the tiny
    # weights once to the MXU-friendly [K, N] layout.
    xk = x_keys.reshape(m, kk)
    xv = x_vals.reshape(m, kv)
    wk_t = jnp.transpose(w_key)  # [kk, nk]
    wv_t = jnp.transpose(w_val)  # [kv, nv]

    # Row tile: multiple of 8 sublanes; ragged last block handled by Pallas
    # (out-of-bounds rows masked on writeback) -> no padding copy.
    tm = min(tile_m, _round_up(max(m, 1), 8))
    grid_m = pl.cdiv(max(m, 1), tm)

    itemsize = jnp.dtype(out_dtype).itemsize
    cost = pl.CostEstimate(
        flops=2 * m * (kk * nk + kv * nv),
        transcendentals=0,
        bytes_accessed=itemsize * (m * (kk + kv) + m * (nk + nv))
        + w_key.dtype.itemsize * (kk * nk + kv * nv),
    )

    z_keys, z_vals = pl.pallas_call(
        _aligner_kernel,
        out_shape=(
            jax.ShapeDtypeStruct((m, nk), out_dtype),
            jax.ShapeDtypeStruct((m, nv), out_dtype),
        ),
        grid=(grid_m,),
        in_specs=[
            # Row tiles of the two inputs; stream through VMEM (pipelined).
            pl.BlockSpec((tm, kk), lambda i: (i, 0)),
            pl.BlockSpec((tm, kv), lambda i: (i, 0)),
            # Tiny weights: same block every step -> fetched once, VMEM-resident.
            pl.BlockSpec((kk, nk), lambda i: (0, 0)),
            pl.BlockSpec((kv, nv), lambda i: (0, 0)),
        ],
        out_specs=[
            pl.BlockSpec((tm, nk), lambda i: (i, 0)),
            pl.BlockSpec((tm, nv), lambda i: (i, 0)),
        ],
        compiler_params=pltpu.CompilerParams(
            # Independent row tiles -> shard the grid across both TCs on v7x.
            dimension_semantics=("parallel",),
        ),
        cost_estimate=cost,
    )(xk, xv, wk_t, wv_t)

    z_key_emb = z_keys.reshape(*batch_shape, nk)
    z_val_emb = z_vals.reshape(*batch_shape, nv)
    return z_key_emb, z_val_emb


if __name__ == "__main__":
    # Small shapes consistent with the module's forward:
    #   x_keys: [batch, n_features, x_key_dim], x_vals: [batch, n_features, x_val_dim]
    batch, n_feat = 2, 8
    x_key_dim, x_val_dim = 32, 8
    z_key_dim, z_val_dim = 64, 64

    key = jax.random.PRNGKey(0)
    k1, k2, k3, k4 = jax.random.split(key, 4)

    x_keys = jax.random.normal(k1, (batch, n_feat, x_key_dim), dtype=jnp.float32)
    x_vals = jax.random.normal(k2, (batch, n_feat, x_val_dim), dtype=jnp.float32)

    # Deterministic synthetic weights (nn.Linear weight layout: [out, in]).
    w_key = jax.random.normal(k3, (z_key_dim, x_key_dim), dtype=jnp.float32) * 0.05
    w_val = jax.random.normal(k4, (z_val_dim, x_val_dim), dtype=jnp.float32) * 0.05

    z_key_emb, z_val_emb = numeric_aligner(x_keys, x_vals, w_key, w_val)
    jax.block_until_ready((z_key_emb, z_val_emb))

    # Reference check against plain JAX.
    ref_k = jnp.maximum(jnp.einsum("bfk,ok->bfo", x_keys, w_key), 0.0)
    ref_v = jnp.maximum(jnp.einsum("bfk,ok->bfo", x_vals, w_val), 0.0)
    assert z_key_emb.shape == (batch, n_feat, z_key_dim)
    assert z_val_emb.shape == (batch, n_feat, z_val_dim)
    assert jnp.allclose(z_key_emb, ref_k, atol=1e-5)
    assert jnp.allclose(z_val_emb, ref_v, atol=1e-5)

    # Also exercise the tiled / ragged path (M large, not a multiple of the tile).
    big_b, big_f = 9, 131  # M = 1179 -> 2 grid steps of 1024 rows, last one ragged
    xb_k = jax.random.normal(k1, (big_b, big_f, x_key_dim), dtype=jnp.float32)
    xb_v = jax.random.normal(k2, (big_b, big_f, x_val_dim), dtype=jnp.float32)
    zb_k, zb_v = numeric_aligner(xb_k, xb_v, w_key, w_val)
    jax.block_until_ready((zb_k, zb_v))
    refb_k = jnp.maximum(jnp.einsum("bfk,ok->bfo", xb_k, w_key), 0.0)
    refb_v = jnp.maximum(jnp.einsum("bfk,ok->bfo", xb_v, w_val), 0.0)
    assert jnp.allclose(zb_k, refb_k, atol=1e-5)
    assert jnp.allclose(zb_v, refb_v, atol=1e-5)

    print("KERNEL_OK")
</pallas_src>

<mosaic_0001>
module attributes {stable_mosaic.version = 11 : i64} {
  func.func @_aligner_kernel(%arg0: i32, %arg1: memref<16x32xf32, #tpu.memory_space<vmem>>, %arg2: memref<16x8xf32, #tpu.memory_space<vmem>>, %arg3: memref<32x64xf32, #tpu.memory_space<vmem>>, %arg4: memref<8x64xf32, #tpu.memory_space<vmem>>, %arg5: memref<16x64xf32, #tpu.memory_space<vmem>>, %arg6: memref<16x64xf32, #tpu.memory_space<vmem>>) attributes {dimension_semantics = [#tpu.dimension_semantics<parallel>], iteration_bounds = array<i64: 1>, scalar_prefetch = 0 : i64, scratch_operands = 0 : i64, tpu.core_type = #tpu.core_type<tc>, window_params = [{transform_indices = @transform_0, window_bounds = array<i64: 16, 32>}, {transform_indices = @transform_1, window_bounds = array<i64: 16, 8>}, {pipeline_mode = #tpu.pipeline_mode<synchronous>, transform_indices = @transform_2, window_bounds = array<i64: 32, 64>}, {pipeline_mode = #tpu.pipeline_mode<synchronous>, transform_indices = @transform_3, window_bounds = array<i64: 8, 64>}, {transform_indices = @transform_4, window_bounds = array<i64: 16, 64>}, {transform_indices = @transform_5, window_bounds = array<i64: 16, 64>}]} {
    %c0 = arith.constant 0 : index
    %c0_0 = arith.constant 0 : index
    %0 = vector.load %arg1[%c0, %c0_0] : memref<16x32xf32, #tpu.memory_space<vmem>>, vector<16x32xf32>
    %c0_1 = arith.constant 0 : index
    %c0_2 = arith.constant 0 : index
    %1 = vector.load %arg3[%c0_1, %c0_2] : memref<32x64xf32, #tpu.memory_space<vmem>>, vector<32x64xf32>
    %cst = arith.constant dense<0.000000e+00> : vector<16x64xf32>
    %2 = tpu.matmul %0, %1, %cst {dimension_numbers = #tpu.dot_dimension_numbers<[1], [0], [0], [1], [0, 0, 1, 1], [], []>} : vector<16x32xf32>, vector<32x64xf32>, vector<16x64xf32> -> vector<16x64xf32>
    %cst_3 = arith.constant 0.000000e+00 : f32
    %3 = vector.broadcast %cst_3 : f32 to vector<16x64xf32>
    %4 = arith.maximumf %2, %3 : vector<16x64xf32>
    %c0_4 = arith.constant 0 : index
    %c0_5 = arith.constant 0 : index
    %5 = vector.load %arg5[%c0_4, %c0_5] : memref<16x64xf32, #tpu.memory_space<vmem>>, vector<16x64xf32>
    tpu.vector_store %arg5[%c0_4, %c0_5], %4 {strides = array<i32>} : memref<16x64xf32, #tpu.memory_space<vmem>>, vector<16x64xf32>,
    %c0_6 = arith.constant 0 : index
    %c0_7 = arith.constant 0 : index
    %6 = vector.load %arg2[%c0_6, %c0_7] : memref<16x8xf32, #tpu.memory_space<vmem>>, vector<16x8xf32>
    %c0_8 = arith.constant 0 : index
    %c0_9 = arith.constant 0 : index
    %7 = vector.load %arg4[%c0_8, %c0_9] : memref<8x64xf32, #tpu.memory_space<vmem>>, vector<8x64xf32>
    %cst_10 = arith.constant dense<0.000000e+00> : vector<16x64xf32>
    %8 = tpu.matmul %6, %7, %cst_10 {dimension_numbers = #tpu.dot_dimension_numbers<[1], [0], [0], [1], [0, 0, 1, 1], [], []>} : vector<16x8xf32>, vector<8x64xf32>, vector<16x64xf32> -> vector<16x64xf32>
    %cst_11 = arith.constant 0.000000e+00 : f32
    %9 = vector.broadcast %cst_11 : f32 to vector<16x64xf32>
    %10 = arith.maximumf %8, %9 : vector<16x64xf32>
    %c0_12 = arith.constant 0 : index
    %c0_13 = arith.constant 0 : index
    %11 = vector.load %arg6[%c0_12, %c0_13] : memref<16x64xf32, #tpu.memory_space<vmem>>, vector<16x64xf32>
    tpu.vector_store %arg6[%c0_12, %c0_13], %10 {strides = array<i32>} : memref<16x64xf32, #tpu.memory_space<vmem>>, vector<16x64xf32>,
    return
  }
  func.func @transform_0(%arg0: i32) -> (i32, i32) {
    %c0_i32 = arith.constant 0 : i32
    %c0_i32_0 = arith.constant 0 : i32
    return %arg0, %c0_i32 : i32, i32
  }
  func.func @transform_1(%arg0: i32) -> (i32, i32) {
    %c0_i32 = arith.constant 0 : i32
    %c0_i32_0 = arith.constant 0 : i32
    return %arg0, %c0_i32 : i32, i32
  }
  func.func @transform_2(%arg0: i32) -> (i32, i32) {
    %c0_i32 = arith.constant 0 : i32
    %c0_i32_0 = arith.constant 0 : i32
    %c0_i32_1 = arith.constant 0 : i32
    return %c0_i32, %c0_i32_0 : i32, i32
  }
  func.func @transform_3(%arg0: i32) -> (i32, i32) {
    %c0_i32 = arith.constant 0 : i32
    %c0_i32_0 = arith.constant 0 : i32
    %c0_i32_1 = arith.constant 0 : i32
    return %c0_i32, %c0_i32_0 : i32, i32
  }
  func.func @transform_4(%arg0: i32) -> (i32, i32) {
    %c0_i32 = arith.constant 0 : i32
    %c0_i32_0 = arith.constant 0 : i32
    return %arg0, %c0_i32 : i32, i32
  }
  func.func @transform_5(%arg0: i32) -> (i32, i32) {
    %c0_i32 = arith.constant 0 : i32
    %c0_i32_0 = arith.constant 0 : i32
    return %arg0, %c0_i32 : i32, i32
  }
}

</mosaic_0001>

<bundles_post_ra>
// kernel: numeric_aligner.1
= control target key start
LH: loop header
LB: loop body
LE: loop exit
PB: predicated region body
PF: predicated region fallthrough
CT: control target
= control target key end

     0   :  { %11 = vsyncpa [#allocation3], 0  ;;  %s445_s0 = inlined_call_operand.hbm [shape: f32[16,32], index: 0, kind: input, shape index: {}]   ;;  %s446_s1 = inlined_call_operand.hbm [shape: f32[16,8], index: 1, kind: input, shape index: {}]   ;;  %s447_s2 = inlined_call_operand.hbm [shape: f32[32,64], index: 2, kind: input, shape index: {}]   ;;  %s448_s3 = inlined_call_operand.hbm [shape: f32[8,64], index: 3, kind: input, shape index: {}]   ;;  %s449_s4 = inlined_call_operand.hbm [shape: f32[16,64], index: 4, kind: output, shape index: {0}]   ;;  %s450_s5 = inlined_call_operand.hbm [shape: f32[16,64], index: 5, kind: output, shape index: {1}]  }
   0x1   :  { %12 = vsyncpa [#allocation6], 0 }
   0x2   :  { %13 = vsyncpa [#allocation9], 0 }
   0x3   :  { %14 = vsyncpa [#allocation4], 0 }
   0x4   :  { %15 = vsyncpa [#allocation12], 0  ;;  %s33_s20 = sshll.u32 %s446_s1, 4  ;;  %s370_s21 = smov [#allocation5]   ;;  %s34_s20 = int_to_ptr.hbm [resolvable:$true] %s33_s20 }
   0x5   :  { %s35_s22 = sshll.u32 %s370_s21, 4  ;;  %s20_s25 = sshll.u32 %s445_s0, 4  ;;  %s36_s22 = int_to_ptr.vmem [resolvable:$true] %s35_s22  ;;  %s21_s25 = int_to_ptr.hbm [resolvable:$true] %s20_s25 }
   0x6   :  { %s371_s26 = smov 128   ;;  %s372_s27 = smov 8  }
   0x7   :  { %41 = dma.hbm_to_vmem [thread:$0]  %s34_s20, 256, %s36_s22, [#allocation6], %s371_s26, %s371_s26, %s372_s27  }
   0x8   :  { %s373_s28 = smov [#allocation2]   ;;  %s46_s1 = sshll.u32 %s447_s2, 4  ;;  %s47_s1 = int_to_ptr.hbm [resolvable:$true] %s46_s1 }
   0x9   :  { %s22_s29 = sshll.u32 %s373_s28, 4  ;;  %s60_s8 = sshll.u32 %s448_s3, 4  ;;  %s23_s29 = int_to_ptr.vmem [resolvable:$true] %s22_s29  ;;  %s61_s8 = int_to_ptr.hbm [resolvable:$true] %s60_s8 }
   0xa   :  { %28 = dma.hbm_to_vmem [thread:$0]  %s21_s25, 256, %s23_s29, [#allocation3], %s371_s26, %s371_s26, %s372_s27  }
   0xb   :  { %s374_s9 = smov [#allocation7]   ;;  %s375_s11 = smov [#allocation8]  }
   0xc   :  { %s48_s10 = sshll.u32 %s374_s9, 4  ;;  %s62_s2 = sshll.u32 %s375_s11, 4  ;;  %s49_s10 = int_to_ptr.vmem [resolvable:$true] %s48_s10  ;;  %s63_s2 = int_to_ptr.vmem [resolvable:$true] %s62_s2 }
   0xd   :  { %54 = dma.hbm_to_vmem [thread:$0]  %s47_s1, 512, %s49_s10, [#allocation6], %s371_s26, %s371_s26, %s372_s27  }
   0xe   :  { %65 = dma.hbm_to_vmem [thread:$0]  %s61_s8, 128, %s63_s2, [#allocation9]  }
   0xf   :  { %360 = dma.done.wait [#allocation3], 256  }
  0x10   :  { %361 = vsyncadd [#allocation3], 4294967040 }
  0x11   :  { %362 = dma.done.wait [#allocation6], 768  }
  0x12   :  { %363 = vsyncadd [#allocation6], 4294966528 }
  0x13   :  { %364 = dma.done.wait [#allocation9], 128  }
  0x14   :  { %365 = vsyncadd [#allocation9], 4294967168  ;;  %v87_v0 = vld [vmem:[#allocation7 + $0x18] sm:$0xff]  ;;  %v86_v1 = vld [vmem:[#allocation7 + $0x10] sm:$0xff]  ;;  %vm126_vm0 = vcmask 64512   ;;  %vm88_vm1 = vcmask 261120  }
  0x15   :  { %203 = vmatpush.msra.mxu2 %v87_v0  ;;  %107 = vmatpush.msra.mxu0 %v87_v0  ;;  %v125_v2 = vld [vmem:[#allocation8] sm:$0xff]  ;;  %v85_v3 = vld [vmem:[#allocation7 + $0x8] sm:$0xff]  ;;  %v124_v4 = vld [vmem:[#allocation5 + $0x8] sm:$0xff]  ;;  %vm120_vm2 = vcmask 523264   ;;  %s376_s3 = smov [#allocation11]   ;;  %s179_s15 = sshll.u32 %s450_s5, 4  ;;  %s180_s15 = int_to_ptr.hbm [resolvable:$true] %s179_s15 }
  0x16   :  { %207 = vmatpush.msra.mxu3 %v125_v2  ;;  %148 = vmatpush.msra.mxu1 %v125_v2  ;;  %v123_v5 = vld [vmem:[#allocation5] sm:$0xff]  ;;  %v84_v6 = vld [vmem:[#allocation7] sm:$0xff]  ;;  %v83_v7 = vld [vmem:[#allocation2 + $0x8] sm:$0xff]  ;;  %s177_s12 = sshll.u32 %s376_s3, 4  ;;  %s377_s16 = smov [#allocation10]   ;;  %s178_s12 = int_to_ptr.vmem [resolvable:$true] %s177_s12 }
  0x17   :  { %204 = vmatpush.msra.mxu2 %v86_v1  ;;  %202 = vmatmul.msk.f32.vlgmr.msra.gmra.mxu3 %vm126_vm0, %v124_v4  ;;  %v82_v8 = vld [vmem:[#allocation2] sm:$0xff]  ;;  %s164_s17 = sshll.u32 %s377_s16, 4  ;;  %s166_s20 = sshll.u32 %s449_s4, 4  ;;  %s165_s17 = int_to_ptr.vmem [resolvable:$true] %s164_s17  ;;  %s167_s20 = int_to_ptr.hbm [resolvable:$true] %s166_s20 }
  0x18   :  { %108 = vmatpush.msra.mxu0 %v86_v1  ;;  %201 = vmatmul.msk.f32.vlgmr.msra.gmra.mxu1 %vm126_vm0, %v123_v5 }
  0x19   :  { %205 = vmatpush.msra.mxu2 %v85_v3 }
  0x1a   :  { %109 = vmatpush.msra.mxu0 %v85_v3 }
  0x1b   :  { %206 = vmatpush.msra.mxu2 %v84_v6 }
  0x1c   :  { %200 = vmatmul.msk.f32.vlgmr.msra.gmra.mxu2 %vm88_vm1, %v83_v7  ;;  %110 = vmatpush.msra.mxu0 %v84_v6 }
  0x1d   :  { %199 = vmatmul.msk.f32.vlgmr.msra.gmra.mxu0 %vm88_vm1, %v82_v8 }
  0x95   :  { %v150_v9 = vpop.f32.mrf.mxu1 }
  0x96   :  { %v156_v10 = vmax.f32 %v150_v9, 0.0 }
  0x98   :  { %158 = vst.msk [vmem:[#allocation11] sm:$0xff] %vm120_vm2, %v156_v10 }
  0x9a   :  { %v112_v11 = vpop.f32.mrf.mxu0  ;;  %v153_v12 = vpop.f32.mrf.mxu3 }
  0x9b   :  { %v118_v13 = vmax.f32 %v112_v11, 0.0  ;;  %v157_v14 = vmax.f32 %v153_v12, 0.0 }
  0x9d   :  { %121 = vst.msk [vmem:[#allocation10] sm:$0xff] %vm120_vm2, %v118_v13 }
  0x9e   :  { %159 = vst.msk [vmem:[#allocation11 + $0x8] sm:$0xff] %vm120_vm2, %v157_v14 }
  0x9f   :  { %v115_v15 = vpop.f32.mrf.mxu2  ;;  %185 = dma.vmem_to_hbm [thread:$0]  %s178_s12, 256, %s180_s15, [#allocation12], %s371_s26, %s371_s26, %s372_s27  }
  0xa0   :  { %v119_v16 = vmax.f32 %v115_v15, 0.0 }
  0xa2   :  { %122 = vst.msk [vmem:[#allocation10 + $0x8] sm:$0xff] %vm120_vm2, %v119_v16 }
  0xa3   :  { %172 = dma.vmem_to_hbm [thread:$0]  %s165_s17, 256, %s167_s20, [#allocation4], %s371_s26, %s371_s26, %s372_s27  }
  0xa4   :  { %366 = dma.done.wait [#allocation4], 256  }
  0xa5   :  { %367 = vsyncadd [#allocation4], 4294967040 }
  0xa6   :  { %368 = dma.done.wait [#allocation12], 256  }
  0xa7   :  { %369 = vsyncadd [#allocation12], 4294967040 }
  0xa8   :  { %194 = vsyncpa [#allocation3], 1 }
  0xa9   :  { %195 = vsyncpa [#allocation6], 1 }
  0xaa   :  { %196 = vsyncpa [#allocation9], 1 }
  0xab   :  { %197 = vsyncpa [#allocation4], 1 }
  0xac   :  { %198 = vsyncpa [#allocation12], 1 }

</bundles_post_ra>
